<compile_context>
chip_gen: v7x
topology: tpu7x:2x2x1
jax: 0.10.0
libtpu: 0.0.40
codegen_flags: <defaults>
</compile_context>

<pallas_src>
import jax
import jax.numpy as jnp
from jax import lax
from jax.experimental import pallas as pl
from jax.experimental.pallas import tpu as pltpu


def _round_up(n, m):
    return ((n + m - 1) // m) * m


def mlp_kernel(x_ref, w1_ref, b1_ref, w2_ref, b2_ref, w3_ref, b3_ref, o_ref):
    # x tile: (tb, 10) f32.  Weights/biases are whole-array VMEM residents in
    # PyTorch-native (out, in) layout; biases are (out, 1) columns.
    x = x_ref[...]

    # Layer 1: h1^T = W1 @ x^T  -> (64, tb).  Contract the last dim of both
    # operands (transposed-RHS matmul, the q@k^T pattern); batch lands in
    # lanes so everything downstream is lane-dense.
    h1t = lax.dot_general(
        w1_ref[...], x,
        dimension_numbers=(((1,), (1,)), ((), ())),
        preferred_element_type=jnp.float32)
    h1t = jnp.maximum(h1t + b1_ref[...], 0.0)                 # (64, tb)

    # Layer 2: h2^T = W2 @ h1^T -> (32, tb).
    h2t = jnp.dot(w2_ref[...], h1t, preferred_element_type=jnp.float32)
    h2t = jnp.maximum(h2t + b2_ref[...], 0.0)                 # (32, tb)

    # Layer 3: y^T = W3 @ h2^T -> (1, tb).  M=1 matmul is fine here: the MXU is
    # otherwise idle and the result is already lane-dense for the store.
    yt = jnp.dot(w3_ref[...], h2t, preferred_element_type=jnp.float32)
    yt = yt + b3_ref[...]                                     # (1, tb)

    o_ref[...] = yt.astype(o_ref.dtype)                       # lane-dense store


def simple_model_forward(x, params, *, block_rows=8192):
    """Fused forward: ReLU(ReLU(x @ W1^T + b1) @ W2^T + b2) @ W3^T + b3."""
    w1, b1, w2, b2, w3, b3 = params
    B, F = x.shape

    # Batch tile: multiple of 128 so the lane-dense (1, tb) output block is
    # layout-legal; capped at ~half the batch so B > 128 always produces >=2
    # grid steps (keeps v7x's second TensorCore busy).  For tiny B just take
    # the whole batch as one full-extent block.
    if B > 128:
        tb = min(_round_up(block_rows, 128),
                 _round_up(pl.cdiv(B, 2), 128))
    else:
        tb = B
    grid = (pl.cdiv(B, tb),)

    # Double-buffered footprint: x tile lane-padded to 512 B/row (x2 buffers),
    # h1^T/h2^T spill (~384 B/row), lane-dense output block is negligible.
    footprint = tb * (2 * 512 + 64 * 4 + 32 * 4) + (1 << 20)
    vmem_limit = int(max(32 << 20, min(2 * footprint, 100 << 20)))

    def resident(arr):
        # Whole-array block, constant block index -> loaded once, VMEM-resident.
        return pl.BlockSpec(arr.shape, lambda i, _nd=arr.ndim: (0,) * _nd)

    out_t = pl.pallas_call(
        mlp_kernel,
        out_shape=jax.ShapeDtypeStruct((1, B), jnp.float32),
        grid=grid,
        in_specs=[
            pl.BlockSpec((tb, F), lambda i: (i, 0)),   # x: tiled over batch
            resident(w1), resident(b1),
            resident(w2), resident(b2),
            resident(w3), resident(b3),
        ],
        out_specs=pl.BlockSpec((1, tb), lambda i: (0, i)),
        compiler_params=pltpu.CompilerParams(
            dimension_semantics=("parallel",),          # megacore-shard batch
            vmem_limit_bytes=vmem_limit,
        ),
    )(x, w1, b1, w2, b2, w3, b3)

    # (1, B) -> (B, 1): contiguous reshape, no extra HBM pass.
    return out_t.reshape(B, 1)


def init_params(key):
    """Deterministic init matching PyTorch Linear layouts.

    Weights in PyTorch-native (out_features, in_features) layout; biases as
    (out_features, 1) columns so they broadcast over the lane (batch) axis.
    """
    k1, k2, k3, k4, k5, k6 = jax.random.split(key, 6)

    def uniform(k, shape, fan_in):
        bound = 1.0 / jnp.sqrt(fan_in)
        return jax.random.uniform(k, shape, jnp.float32, -bound, bound)

    w1 = uniform(k1, (64, 10), 10)
    b1 = uniform(k2, (64, 1), 10)
    w2 = uniform(k3, (32, 64), 64)
    b2 = uniform(k4, (32, 1), 64)
    w3 = uniform(k5, (1, 32), 32)
    b3 = uniform(k6, (1, 1), 32)
    return (w1, b1, w2, b2, w3, b3)


def reference_forward(x, params):
    w1, b1, w2, b2, w3, b3 = params
    h1 = jnp.maximum(x @ w1.T + b1[:, 0], 0.0)
    h2 = jnp.maximum(h1 @ w2.T + b2[:, 0], 0.0)
    return h2 @ w3.T + b3[:, 0]


if __name__ == "__main__":
    key = jax.random.PRNGKey(0)
    pkey, xkey = jax.random.split(key)
    params = init_params(pkey)

    # 64: single full block; 37: non-aligned full-extent block; 300: multi-step
    # grid with a ragged (masked) final block.
    for batch in (64, 37, 300):
        x = jax.random.normal(jax.random.fold_in(xkey, batch), (batch, 10),
                              jnp.float32)
        out = jax.block_until_ready(simple_model_forward(x, params))
        assert out.shape == (batch, 1)

        ref = reference_forward(x, params)
        # Both sides use default TPU matmul precision; tolerance covers the
        # bf16-pass rounding of the tiny (K<=64) contractions.
        assert jnp.allclose(out, ref, atol=2e-2, rtol=2e-2), (
            batch, float(jnp.max(jnp.abs(out - ref))))

    print("KERNEL_OK")
</pallas_src>

<mosaic_0001>
module attributes {stable_mosaic.version = 11 : i64} {
  func.func @mlp_kernel(%arg0: i32, %arg1: memref<64x10xf32, #tpu.memory_space<vmem>>, %arg2: memref<64x10xf32, #tpu.memory_space<vmem>>, %arg3: memref<64x1xf32, #tpu.memory_space<vmem>>, %arg4: memref<32x64xf32, #tpu.memory_space<vmem>>, %arg5: memref<32x1xf32, #tpu.memory_space<vmem>>, %arg6: memref<1x32xf32, #tpu.memory_space<vmem>>, %arg7: memref<1x1xf32, #tpu.memory_space<vmem>>, %arg8: memref<1x64xf32, #tpu.memory_space<vmem>>) attributes {dimension_semantics = [#tpu.dimension_semantics<parallel>], iteration_bounds = array<i64: 1>, scalar_prefetch = 0 : i64, scratch_operands = 0 : i64, tpu.core_type = #tpu.core_type<tc>, window_params = [{transform_indices = @transform_0, window_bounds = array<i64: 64, 10>}, {pipeline_mode = #tpu.pipeline_mode<synchronous>, transform_indices = @transform_1, window_bounds = array<i64: 64, 10>}, {pipeline_mode = #tpu.pipeline_mode<synchronous>, transform_indices = @transform_2, window_bounds = array<i64: 64, 1>}, {pipeline_mode = #tpu.pipeline_mode<synchronous>, transform_indices = @transform_3, window_bounds = array<i64: 32, 64>}, {pipeline_mode = #tpu.pipeline_mode<synchronous>, transform_indices = @transform_4, window_bounds = array<i64: 32, 1>}, {pipeline_mode = #tpu.pipeline_mode<synchronous>, transform_indices = @transform_5, window_bounds = array<i64: 1, 32>}, {pipeline_mode = #tpu.pipeline_mode<synchronous>, transform_indices = @transform_6, window_bounds = array<i64: 1, 1>}, {transform_indices = @transform_7, window_bounds = array<i64: 1, 64>}]} {
    %c0 = arith.constant 0 : index
    %c0_0 = arith.constant 0 : index
    %0 = vector.load %arg1[%c0, %c0_0] : memref<64x10xf32, #tpu.memory_space<vmem>>, vector<64x10xf32>
    %c0_1 = arith.constant 0 : index
    %c0_2 = arith.constant 0 : index
    %1 = vector.load %arg2[%c0_1, %c0_2] : memref<64x10xf32, #tpu.memory_space<vmem>>, vector<64x10xf32>
    %cst = arith.constant dense<0.000000e+00> : vector<64x64xf32>
    %2 = tpu.matmul %1, %0, %cst {dimension_numbers = #tpu.dot_dimension_numbers<[1], [1], [0], [0], [0, 0, 1, 0], [], []>} : vector<64x10xf32>, vector<64x10xf32>, vector<64x64xf32> -> vector<64x64xf32>
    %c0_3 = arith.constant 0 : index
    %c0_4 = arith.constant 0 : index
    %3 = vector.load %arg3[%c0_3, %c0_4] : memref<64x1xf32, #tpu.memory_space<vmem>>, vector<64x1xf32>
    %4 = vector.broadcast %3 : vector<64x1xf32> to vector<64x64xf32>
    %5 = arith.addf %2, %4 : vector<64x64xf32>
    %cst_5 = arith.constant 0.000000e+00 : f32
    %6 = vector.broadcast %cst_5 : f32 to vector<64x64xf32>
    %7 = arith.maximumf %5, %6 : vector<64x64xf32>
    %c0_6 = arith.constant 0 : index
    %c0_7 = arith.constant 0 : index
    %8 = vector.load %arg4[%c0_6, %c0_7] : memref<32x64xf32, #tpu.memory_space<vmem>>, vector<32x64xf32>
    %cst_8 = arith.constant dense<0.000000e+00> : vector<32x64xf32>
    %9 = tpu.matmul %8, %7, %cst_8 {dimension_numbers = #tpu.dot_dimension_numbers<[1], [0], [0], [1], [0, 0, 1, 1], [], []>} : vector<32x64xf32>, vector<64x64xf32>, vector<32x64xf32> -> vector<32x64xf32>
    %c0_9 = arith.constant 0 : index
    %c0_10 = arith.constant 0 : index
    %10 = vector.load %arg5[%c0_9, %c0_10] : memref<32x1xf32, #tpu.memory_space<vmem>>, vector<32x1xf32>
    %11 = vector.broadcast %10 : vector<32x1xf32> to vector<32x64xf32>
    %12 = arith.addf %9, %11 : vector<32x64xf32>
    %cst_11 = arith.constant 0.000000e+00 : f32
    %13 = vector.broadcast %cst_11 : f32 to vector<32x64xf32>
    %14 = arith.maximumf %12, %13 : vector<32x64xf32>
    %c0_12 = arith.constant 0 : index
    %c0_13 = arith.constant 0 : index
    %15 = vector.load %arg6[%c0_12, %c0_13] : memref<1x32xf32, #tpu.memory_space<vmem>>, vector<1x32xf32>
    %cst_14 = arith.constant dense<0.000000e+00> : vector<1x64xf32>
    %16 = tpu.matmul %15, %14, %cst_14 {dimension_numbers = #tpu.dot_dimension_numbers<[1], [0], [0], [1], [0, 0, 1, 1], [], []>} : vector<1x32xf32>, vector<32x64xf32>, vector<1x64xf32> -> vector<1x64xf32>
    %c0_15 = arith.constant 0 : index
    %c0_16 = arith.constant 0 : index
    %17 = vector.load %arg7[%c0_15, %c0_16] : memref<1x1xf32, #tpu.memory_space<vmem>>, vector<1x1xf32>
    %18 = vector.broadcast %17 : vector<1x1xf32> to vector<1x64xf32>
    %19 = arith.addf %16, %18 : vector<1x64xf32>
    %c0_17 = arith.constant 0 : index
    %c0_18 = arith.constant 0 : index
    %20 = vector.load %arg8[%c0_17, %c0_18] : memref<1x64xf32, #tpu.memory_space<vmem>>, vector<1x64xf32>
    tpu.vector_store %arg8[%c0_17, %c0_18], %19 {strides = array<i32>} : memref<1x64xf32, #tpu.memory_space<vmem>>, vector<1x64xf32>,
    return
  }
  func.func @transform_0(%arg0: i32) -> (i32, i32) {
    %c0_i32 = arith.constant 0 : i32
    %c0_i32_0 = arith.constant 0 : i32
    return %arg0, %c0_i32 : i32, i32
  }
  func.func @transform_1(%arg0: i32) -> (i32, i32) {
    %c0_i32 = arith.constant 0 : i32
    %c0_i32_0 = arith.constant 0 : i32
    %c0_i32_1 = arith.constant 0 : i32
    return %c0_i32, %c0_i32_0 : i32, i32
  }
  func.func @transform_2(%arg0: i32) -> (i32, i32) {
    %c0_i32 = arith.constant 0 : i32
    %c0_i32_0 = arith.constant 0 : i32
    %c0_i32_1 = arith.constant 0 : i32
    return %c0_i32, %c0_i32_0 : i32, i32
  }
  func.func @transform_3(%arg0: i32) -> (i32, i32) {
    %c0_i32 = arith.constant 0 : i32
    %c0_i32_0 = arith.constant 0 : i32
    %c0_i32_1 = arith.constant 0 : i32
    return %c0_i32, %c0_i32_0 : i32, i32
  }
  func.func @transform_4(%arg0: i32) -> (i32, i32) {
    %c0_i32 = arith.constant 0 : i32
    %c0_i32_0 = arith.constant 0 : i32
    %c0_i32_1 = arith.constant 0 : i32
    return %c0_i32, %c0_i32_0 : i32, i32
  }
  func.func @transform_5(%arg0: i32) -> (i32, i32) {
    %c0_i32 = arith.constant 0 : i32
    %c0_i32_0 = arith.constant 0 : i32
    %c0_i32_1 = arith.constant 0 : i32
    return %c0_i32, %c0_i32_0 : i32, i32
  }
  func.func @transform_6(%arg0: i32) -> (i32, i32) {
    %c0_i32 = arith.constant 0 : i32
    %c0_i32_0 = arith.constant 0 : i32
    %c0_i32_1 = arith.constant 0 : i32
    return %c0_i32, %c0_i32_0 : i32, i32
  }
  func.func @transform_7(%arg0: i32) -> (i32, i32) {
    %c0_i32 = arith.constant 0 : i32
    %c0_i32_0 = arith.constant 0 : i32
    return %c0_i32, %arg0 : i32, i32
  }
}

</mosaic_0001>

<bundles_post_ra>
// kernel: tpu_custom_call.1
= control target key start
LH: loop header
LB: loop body
LE: loop exit
PB: predicated region body
PF: predicated region fallthrough
CT: control target
= control target key end

     0   :  { %s871_s0 = inlined_call_operand.vmem [shape: f32[64,10], index: 0, kind: input, shape index: {}]   ;;  %s872_s1 = inlined_call_operand.vmem [shape: f32[64,10], index: 1, kind: input, shape index: {}]   ;;  %s873_s2 = inlined_call_operand.vmem [shape: f32[64,1], index: 2, kind: input, shape index: {}]   ;;  %s874_s3 = inlined_call_operand.vmem [shape: f32[32,64], index: 3, kind: input, shape index: {}]   ;;  %s875_s4 = inlined_call_operand.vmem [shape: f32[32,1], index: 4, kind: input, shape index: {}]   ;;  %s876_s5 = inlined_call_operand.vmem [shape: f32[1,32], index: 5, kind: input, shape index: {}]   ;;  %s877_s6 = inlined_call_operand.<no memory space> [shape: f32[1,1], index: 6, kind: input, shape index: {}]   ;;  %s878_s7 = inlined_call_operand.hbm [shape: f32[1,64], index: 7, kind: output, shape index: {}]  }
   0x1   :  { %v12_v0 = vstv %s877_s6 }
   0x2   :  { %13 = vst [vmem:[#allocation2] sm:$0x1] %v12_v0 }
   0x3   :  { %v29_v1 = vld [vmem:[%s871_s0] sm:$0xff]  ;;  %v30_v2 = vld [vmem:[%s871_s0 + $0x8] sm:$0xff]  ;;  %vm93_vm0 = vcmask 80896   ;;  %v31_v3 = vld [vmem:[%s871_s0 + $0x10] sm:$0xff]  ;;  %v678_v7 = vmov 0  }
   0x4   :  { %v601_v4 = vpack.c.bf16 %v30_v2, %v29_v1  ;;  %vm737_vm1 = vmpackc.low %vm93_vm0, %vm93_vm0  ;;  %v32_v6 = vld [vmem:[%s871_s0 + $0x18] sm:$0xff]  ;;  %652 = vset.pattern.permute.xlu0 %v678_v7  ;;  %653 = vset.pattern.permute.xlu1 %v678_v7  ;;  %v37_v9 = vld [vmem:[%s872_s1] sm:$0xff] }
   0x5   :  { %v607_v8 = vpack.c.bf16 %v32_v6, %v31_v3  ;;  %556 = vmatprep.mubr.msk.f32.mxu0 %vm93_vm0, %v37_v9  ;;  %v45_v10 = vld [vmem:[%s873_s2] sm:$0xff]  ;;  %v34_v12 = vld [vmem:[%s871_s0 + $0x28] sm:$0xff]  ;;  %v47_v13 = vld [vmem:[%s873_s2 + $0x10] sm:$0xff] }
   0x6   :  { %603 = vmatprep.subr.msk.bf16.mxu0 %vm737_vm1, %v601_v4  ;;  %v33_v11 = vld [vmem:[%s871_s0 + $0x20] sm:$0xff]  ;;  %55 = vperm.xlu0 %652, %v45_v10   ;;  %v46_v14 = vld [vmem:[%s873_s2 + $0x8] sm:$0xff]  ;;  %v48_v15 = vld [vmem:[%s873_s2 + $0x18] sm:$0xff] }
   0x7   :  { %606 = vmatpush3.bf16.xpose.msk.msra.mxu0 %vm737_vm1, %v601_v4  ;;  %65 = vperm.xlu1 %653, %v47_v13   ;;  %v613_v16 = vpack.c.bf16 %v34_v12, %v33_v11 }
   0x8   :  { %609 = vmatprep.subr.msk.bf16.mxu0 %vm737_vm1, %v607_v8 }
   0xa   :  { %60 = vperm.xlu0 %652, %v46_v14  }
   0xb   :  { %14 = vsyncpa [#allocation4], 0  ;;  %v49_v17 = vld [vmem:[%s873_s2 + $0x20] sm:$0xff]  ;;  %70 = vperm.xlu1 %653, %v48_v15   ;;  %v50_v18 = vld [vmem:[%s873_s2 + $0x28] sm:$0xff]  ;;  %vm283_vm2 = vcmask 523264   ;;  %v679_v12 = vmov 0.0|0.0  }
   0xc   :  { %v35_v19 = vld [vmem:[%s871_s0 + $0x30] sm:$0xff]  ;;  %v36_v20 = vld [vmem:[%s871_s0 + $0x38] sm:$0xff]  ;;  %v259_v24 = vld [vmem:[%s875_s4] sm:$0xff]  ;;  %vm680_vm3 = vmmov 0   ;;  %v681_v13 = vmov 0.0   ;;  %vm396_vm4 = vcmask 261120  }
   0xd   :  { %v51_v21 = vld [vmem:[%s873_s2 + $0x30] sm:$0xff]  ;;  %v52_v22 = vld [vmem:[%s873_s2 + $0x38] sm:$0xff]  ;;  %v619_v23 = vpack.c.bf16 %v36_v20, %v35_v19  ;;  %v260_v25 = vld [vmem:[%s875_s4 + $0x8] sm:$0xff]  ;;  %s682_s14 = smov [#allocation3]   ;;  %vm470_vm5 = vcmask 516096  }
   0xe   :  { %75 = vperm.xlu0 %652, %v49_v17   ;;  %v261_v26 = vld [vmem:[%s875_s4 + $0x10] sm:$0xff]  ;;  %v262_v27 = vld [vmem:[%s875_s4 + $0x18] sm:$0xff]  ;;  %v386_v28 = vld [vmem:[#allocation2] sm:$0x1]  ;;  %s478_s15 = sshll.u32 %s682_s14, 4  ;;  %s479_s15 = int_to_ptr.vmem [resolvable:$true] %s478_s15 }
   0xf   :  { %612 = vmatpush3.bf16.xpose.msk.msra.mxu0 %vm737_vm1, %v607_v8  ;;  %80 = vperm.xlu1 %653, %v50_v18   ;;  %v38_v29 = vld [vmem:[%s872_s1 + $0x8] sm:$0xff]  ;;  %v39_v30 = vld [vmem:[%s872_s1 + $0x10] sm:$0xff]  ;;  %v40_v31 = vld [vmem:[%s872_s1 + $0x18] sm:$0xff]  ;;  %s654_s2 = scalar_lea.vmem %s479_s15, 16  ;;  %s658_s16 = scalar_lea.vmem %s479_s15, 32 }
  0x10   :  { %615 = vmatprep.subr.msk.bf16.mxu0 %vm737_vm1, %v613_v16  ;;  %v41_v32 = vld [vmem:[%s872_s1 + $0x20] sm:$0xff]  ;;  %v42_v33 = vld [vmem:[%s872_s1 + $0x28] sm:$0xff]  ;;  %v43_v34 = vld [vmem:[%s872_s1 + $0x30] sm:$0xff]  ;;  %p655_p0 = scmp.ne.s32.totalorder %s479_s15, %s654_s2  ;;  %p659_p1 = scmp.lt.s32.totalorder %s479_s15, %s479_s15 }
  0x11   :  { %v44_v35 = vld [vmem:[%s872_s1 + $0x38] sm:$0xff]  ;;  %v255_v36 = vld [vmem:[%s874_s3] sm:$0xff]  ;;  %v256_v9 = vld [vmem:[%s874_s3 + $0x8] sm:$0xff]  ;;  %p660_p2 = scmp.lt.s32.totalorder %s658_s16, %s654_s2 }
  0x12   :  { %85 = vperm.xlu0 %652, %v51_v21   ;;  %584 = vmatprep.mubr.msk.f32.mxu1 %vm283_vm2, %v255_v36  ;;  %v257_v10 = vld [vmem:[%s874_s3 + $0x10] sm:$0xff]  ;;  %v258_v11 = vld [vmem:[%s874_s3 + $0x18] sm:$0xff] }
  0x13   :  { %90 = vperm.xlu1 %653, %v52_v22   ;;  %p661_p3 = por %p660_p2, %p659_p1 }
  0x15   :  { %p662_p4 = pnand %p661_p3, %p655_p0 }
  0x16   :  { %265 = vperm.xlu0 %652, %v259_v24  }
  0x17   :  { %618 = vmatpush3.bf16.xpose.msk.msra.mxu0 %vm737_vm1, %v613_v16  ;;  %270 = vperm.xlu1 %653, %v260_v25  }
  0x18   :  { %621 = vmatprep.subr.msk.bf16.mxu0 %vm737_vm1, %v619_v23 }
  0x1a   :  { %275 = vperm.xlu0 %652, %v261_v26  }
  0x1b   :  { %280 = vperm.xlu1 %653, %v262_v27  }
  0x1e   :  { %389 = vperm.xlu0 %652, %v386_v28  }
  0x1f   :  { %624 = vmatpush3.bf16.xpose.msk.msra.mxu0 %vm737_vm1, %v619_v23 }
  0x26   :  { %557 = vmatmul.mubr.msk.f32.vlgmr.msra.gmra.mrb[0].mxu0 %vm93_vm0, %v38_v29 }
  0x27   :  { %559 = vmatprep.mubr.msk.f32.mxu0 %vm93_vm0, %v39_v30 }
  0x2a   :  { %560 = vmatmul.mubr.msk.f32.gmra.mrb[2].mxu0 %vm93_vm0, %v40_v31 }
  0x2b   :  { %562 = vmatprep.mubr.msk.f32.mxu0 %vm93_vm0, %v41_v32  ;;  %v385_v32 = vld [vmem:[%s876_s5] sm:$0x1] }
  0x2e   :  { %563 = vmatmul.mubr.msk.f32.gmra.mrb[4].mxu0 %vm93_vm0, %v42_v33  ;;  %v392_v33 = vlaneseq }
  0x2f   :  { %565 = vmatprep.mubr.msk.f32.mxu0 %vm93_vm0, %v43_v34 }
  0x30   :  { %v393_v34 = vshrl.u32 %v392_v33, 7 }
  0x32   :  { %566 = vmatmul.mubr.msk.f32.gmra.mrb[6].mxu0 %vm93_vm0, %v44_v35  ;;  %v394_v35 = vsub.s32 0, %v393_v34 }
  0x85   :  { %v56_v37 = vpop.permute.xlu0 %55 }
  0x86   :  { %v66_v38 = vpop.permute.xlu1 %65 }
  0x89   :  { %v61_v39 = vpop.permute.xlu0 %60 }
  0x8a   :  { %v71_v40 = vpop.permute.xlu1 %70 }
  0x8d   :  { %v76_v53 = vpop.permute.xlu0 %75 }
  0x8e   :  { %v81_v50 = vpop.permute.xlu1 %80 }
  0x91   :  { %v86_v1 = vpop.permute.xlu0 %85 }
  0x92   :  { %v91_v62 = vpop.permute.xlu1 %90 }
  0x95   :  { %v266_v15 = vpop.permute.xlu0 %265 }
  0x96   :  { %v271_v14 = vpop.permute.xlu1 %270 }
  0x99   :  { %v276_v24 = vpop.permute.xlu0 %275 }
  0x9a   :  { %v281_v21 = vpop.permute.xlu1 %280 }
  0x9d   :  { %v390_v36 = vpop.permute.xlu0 %389 }
  0xf9   :  { %v558_v41 = vpop.f32.mrb[0].mxu0 }
  0xfa   :  { %v214_v42 = vadd.f32 %v558_v41, %v61_v39  ;;  %v208_v43 = vpop.f32.mrb[1].mxu0 }
  0xfb   :  { %v209_v44 = vadd.f32 %v208_v43, %v56_v37  ;;  %v395_v37 = vrot.slane %v390_v36, %v394_v35 }
  0xfc   :  { %v248_v45 = vmax.f32 %v214_v42, 0.0 }
  0xfd   :  { %v247_v46 = vmax.f32 %v209_v44, 0.0  ;;  %v561_v47 = vpop.f32.mrb[2].mxu0 }
  0xfe   :  { %v224_v48 = vadd.f32 %v561_v47, %v71_v40  ;;  %v218_v49 = vpop.f32.mrb[3].mxu0 }
  0xff   :  { %v219_v51 = vadd.f32 %v218_v49, %v66_v38  ;;  %v625_v52 = vpack.c.bf16 %v248_v45, %v247_v46 }
 0x100   :  { %v250_v54 = vmax.f32 %v224_v48, 0.0 }
 0x101   :  { %v249_v55 = vmax.f32 %v219_v51, 0.0  ;;  %v564_v56 = vpop.f32.mrb[4].mxu0  ;;  %626 = vmatprep.subr.bf16.mxu1 %v625_v52 }
 0x102   :  { %v234_v57 = vadd.f32 %v564_v56, %v81_v50  ;;  %v228_v58 = vpop.f32.mrb[5].mxu0  ;;  %628 = vmatpush3.bf16.msra.mxu1 %v625_v52 }
 0x103   :  { %v629_v59 = vpack.c.bf16 %v250_v54, %v249_v55  ;;  %v229_v60 = vadd.f32 %v228_v58, %v76_v53 }
 0x104   :  { %v252_v61 = vmax.f32 %v234_v57, 0.0 }
 0x105   :  { %v251_v63 = vmax.f32 %v229_v60, 0.0  ;;  %v567_v0 = vpop.f32.mrb[6].mxu0  ;;  %630 = vmatprep.subr.bf16.mxu1 %v629_v59 }
 0x106   :  { %v244_v2 = vadd.f32 %v567_v0, %v91_v62  ;;  %v238_v3 = vpop.f32.mrb[7].mxu0  ;;  %632 = vmatpush3.bf16.msra.mxu1 %v629_v59 }
 0x107   :  { %v633_v4 = vpack.c.bf16 %v252_v61, %v251_v63  ;;  %v239_v5 = vadd.f32 %v238_v3, %v86_v1 }
 0x108   :  { %v254_v6 = vmax.f32 %v244_v2, 0.0 }
 0x109   :  { %v253_v7 = vmax.f32 %v239_v5, 0.0  ;;  %634 = vmatprep.subr.bf16.mxu1 %v633_v4 }
 0x10a   :  { %636 = vmatpush3.bf16.msra.mxu1 %v633_v4 }
 0x10b   :  { %v637_v8 = vpack.c.bf16 %v254_v6, %v253_v7 }
 0x10d   :  { %638 = vmatprep.subr.bf16.mxu1 %v637_v8 }
 0x10e   :  { %640 = vmatpush3.bf16.msra.mxu1 %v637_v8 }
 0x10f   :  { %641 = vmatprep.subr.bf16.mxu1 %v679_v12 }
 0x111   :  { %585 = vmatmul.mubr.msk.f32.vlgmr.msra.gmra.mrb[0].mxu1 %vm283_vm2, %v256_v9 }
 0x112   :  { %587 = vmatprep.mubr.msk.f32.mxu1 %vm283_vm2, %v257_v10 }
 0x115   :  { %588 = vmatmul.mubr.msk.f32.gmra.mrb[2].mxu1 %vm283_vm2, %v258_v11 }
 0x116   :  { %598 = vmatprep.mubr.msk.f32.mxu1 %vm680_vm3, %v681_v13 }
 0x1e4   :  { %v586_v16 = vpop.f32.mrb[0].mxu1 }
 0x1e5   :  { %v368_v17 = vadd.f32 %v586_v16, %v271_v14  ;;  %v362_v18 = vpop.f32.mrb[1].mxu1 }
 0x1e6   :  { %v363_v19 = vadd.f32 %v362_v18, %v266_v15 }
 0x1e7   :  { %v382_v20 = vmax.f32 %v368_v17, 0.0 }
 0x1e8   :  { %v381_v22 = vmax.f32 %v363_v19, 0.0  ;;  %v589_v23 = vpop.f32.mrb[2].mxu1 }
 0x1e9   :  { %v378_v25 = vadd.f32 %v589_v23, %v281_v21  ;;  %v372_v26 = vpop.f32.mrb[3].mxu1 }
 0x1ea   :  { %v642_v27 = vpack.c.bf16 %v382_v20, %v381_v22  ;;  %v373_v28 = vadd.f32 %v372_v26, %v276_v24 }
 0x1eb   :  { %v384_v29 = vmax.f32 %v378_v25, 0.0 }
 0x1ec   :  { %v383_v30 = vmax.f32 %v373_v28, 0.0  ;;  %643 = vmatpush3.bf16.msra.mxu1 %v642_v27 }
 0x1ed   :  { %644 = vmatprep.subr.bf16.mxu1 %v679_v12 }
 0x1ee   :  { %v645_v31 = vpack.c.bf16 %v384_v29, %v383_v30 }
 0x1f0   :  { %646 = vmatpush3.bf16.msra.mxu1 %v645_v31 }
 0x1f3   :  { %599 = vmatmul.mubr.msk.f32.vlgmr.msra.gmra.mrb[4].mxu1 %vm396_vm4, %v385_v32 }
 0x2c6   :  { %v466_v38 = vpop.f32.mrb[4].mxu1 }
 0x2c7   :  { %v467_v39 = vadd.f32 %v466_v38, %v395_v37  ;;  %v600_v40 = vpop.f32.mrb[5].mxu1 }
 0x2c9   :  { %471 = vst.msk [vmem:[#allocation3] sm:$0x1] %vm470_vm5, %v467_v39 }
 0x2ca   :  { %665 = shalt.err (!%p662_p4)
}
 0x2cb   :  { %s666_s18 = scalar_lea.hbm %s878_s7, 16 }
 0x2cc   :  { %p667_p5 = scmp.ne.s32.totalorder %s878_s7, %s666_s18  ;;  %p670_p6 = scmp.lt.u32.totalorder %s666_s18, %s878_s7 }
 0x2ce   :  { %p672_p7 = pnand %p670_p6, %p667_p5 }
 0x2d0   :  { %675 = shalt.err (!%p672_p7)
}
 0x2d1   :  { %481 = dma.vmem_to_hbm [thread:$0]  %s479_s15, 16, %s878_s7, [#allocation4]  }
 0x2d2   :  { %676 = dma.done.wait [#allocation4], 16  }
 0x2d3   :  { %677 = vsyncadd [#allocation4], 4294967280 }
 0x2d4   :  { %485 = vsyncpa [#allocation4], 1 }

</bundles_post_ra>
